<compile_context>
chip_gen: v6e
topology: v6e:2x2x1
jax: 0.10.0
libtpu: 0.0.40
codegen_flags: <defaults>
</compile_context>

<pallas_src>
import functools

import jax
import jax.numpy as jnp
from jax.experimental import pallas as pl
from jax.experimental.pallas import tpu as pltpu

LN_EPS = 1e-5  # nn.LayerNorm default eps


def _round_up(x, m):
    return (x + m - 1) // m * m


def _vmem_budget_bytes():
    """Per-generation scoped-VMEM budget (~75% of physical VMEM)."""
    try:
        cap = pltpu.get_tpu_info().vmem_capacity_bytes
    except Exception:
        cap = 64 * 1024 * 1024          # conservative (v7x-sized) fallback
    return min(int(cap * 3 // 4), 112 * 1024 * 1024)


def _encoder_kernel(x_ref, w0_ref, aff0_ref, w1_ref, aff1_ref,
                    wmulv_ref, bmulv_ref, eps_ref,
                    out_ref, acc_ref, *, n_h1, n_h2):
    k = pl.program_id(1)

    # ---- K-tiled first matmul: bf16 operands on the MXU, f32 accumulation ----
    part = jnp.dot(x_ref[...], w0_ref[...], preferred_element_type=jnp.float32)

    @pl.when(k == 0)
    def _first():                       # write-through: no zero-init pass
        acc_ref[...] = part

    @pl.when(k > 0)
    def _accumulate():
        acc_ref[...] += part

    @pl.when(k == pl.num_programs(1) - 1)
    def _epilogue():
        def bias_ln_relu(h_lin, aff, n_true):
            # Masked, two-pass LayerNorm over the first n_true lanes.
            # Padded lanes of h_lin are exactly 0 (zero-padded weights/bias),
            # so plain sums are already "masked"; centering must re-mask.
            h = h_lin + aff[0:1, :]                      # linear bias
            lane = jax.lax.broadcasted_iota(jnp.int32, h.shape, 1)
            inv_n = 1.0 / n_true
            m = jnp.sum(h, axis=-1, keepdims=True) * inv_n
            c = jnp.where(lane < n_true, h - m, 0.0)
            var = jnp.sum(c * c, axis=-1, keepdims=True) * inv_n
            h = c * jax.lax.rsqrt(var + LN_EPS) * aff[1:2, :] + aff[2:3, :]
            return jnp.maximum(h, 0.0)                   # padded lanes stay 0

        # hidden0 epilogue (matmul already accumulated), then hidden1.
        h = bias_ln_relu(acc_ref[...], aff0_ref[...], n_h1)
        h = bias_ln_relu(
            jnp.dot(h.astype(jnp.bfloat16), w1_ref[...],
                    preferred_element_type=jnp.float32),
            aff1_ref[...], n_h2)

        # ---- fused, lane-padded head: [ mu (Lp cols) | lnVar (Lp cols) ] ----
        head = jnp.dot(h.astype(jnp.bfloat16), wmulv_ref[...],
                       preferred_element_type=jnp.float32) + bmulv_ref[...]
        lp = head.shape[-1] // 2
        mean = head[:, :lp]
        lnvar = head[:, lp:]

        # reparameterization + KL (single EUP exp; s*s == exp(lnvar)).
        # Padded head columns give mean=0, lnvar=0 -> KL contribution is 0.
        s = jnp.exp(0.5 * lnvar)
        z = s * eps_ref[...] + mean
        kl_rows = 0.5 * jnp.sum(mean * mean + s * s - lnvar - 1.0,
                                axis=-1, keepdims=True)

        # Lane-dense output slab: [ z | kl_row broadcast ].
        out_ref[...] = jnp.concatenate(
            [z, jnp.broadcast_to(kl_rows, z.shape)], axis=-1
        ).astype(out_ref.dtype)


def encoder_forward(x, params, eps, *, block_b=512, block_k=2048):
    """Full Encoder forward in one Pallas kernel. Returns (z, kl_div_loss)."""
    B, d_in = x.shape
    h1, h2, L = params["h1"], params["h2"], params["latent"]
    w0 = params["w0"]
    h1p = w0.shape[1]
    h2p = params["w1"].shape[1]
    w2 = params["wmulv"].shape[1]          # 2 * Lp (multiple of 256)
    lp = w2 // 2
    assert eps.shape == (B, L)

    # ---- batch tiling (parallel axis) ----
    bt = min(block_b, _round_up(B, 8))
    n_tiles = pl.cdiv(B, bt)
    if n_tiles % 2 == 1 and B > 8:
        # v7x has 2 TensorCores fed by the "parallel" batch axis: keep the
        # batch-tile count even (>=2) so neither TC sits idle / imbalanced.
        bt = _round_up(pl.cdiv(B, n_tiles + 1), 8)

    # ---- K tiling of the first (dominant) matmul ----
    tk = d_in if d_in <= block_k else _round_up(block_k, 128)

    # ---- fit the double-buffered working set into the VMEM budget ----
    budget = _vmem_budget_bytes()

    def est(bt_, tk_):
        return (2 * bt_ * tk_ * 2 + 2 * tk_ * h1p * 2      # x, w0 tiles (bf16)
                + 2 * 3 * h1p * 4 + 2 * h1p * h2p * 2      # aff0, w1
                + 2 * 3 * h2p * 4 + 2 * h2p * w2 * 2       # aff1, wmulv
                + 2 * 1 * w2 * 4 + 2 * bt_ * lp * 4        # bmulv, eps
                + 2 * bt_ * w2 * 4 + bt_ * h1p * 4)        # out, acc scratch

    while est(bt, tk) > budget and tk >= 1024 and tk % 128 == 0:
        tk //= 2
    while est(bt, tk) > budget and bt > 64:
        bt = _round_up(max(64, bt // 2), 8)

    b_pad = _round_up(B, bt)
    k_pad = _round_up(d_in, tk)

    # ---- operand padding; x streamed as bf16 (halves its HBM traffic) ----
    x_p = x.astype(jnp.bfloat16)
    if (b_pad, k_pad) != (B, d_in):
        x_p = jnp.pad(x_p, ((0, b_pad - B), (0, k_pad - d_in)))
    eps_p = eps.astype(jnp.float32)
    if (b_pad, lp) != (B, L):
        eps_p = jnp.pad(eps_p, ((0, b_pad - B), (0, lp - L)))
    if k_pad != d_in:
        w0 = jnp.pad(w0, ((0, k_pad - d_in), (0, 0)))

    grid = (b_pad // bt, k_pad // tk)
    kernel = functools.partial(_encoder_kernel, n_h1=h1, n_h2=h2)

    # TODO(synk): once supported/verified in the target JAX build, single-buffer
    # the constant-index operands (w1/aff*/wmulv/bmulv) and deepen the x/w0
    # streams via pl.BlockSpec(..., pipeline_mode=pl.Buffered(n)).
    out = pl.pallas_call(
        kernel,
        out_shape=jax.ShapeDtypeStruct((b_pad, w2), jnp.float32),
        grid_spec=pltpu.PrefetchScalarGridSpec(
            num_scalar_prefetch=0,
            grid=grid,
            in_specs=[
                pl.BlockSpec((bt, tk), lambda i, k: (i, k)),     # x tile (bf16)
                pl.BlockSpec((tk, h1p), lambda i, k: (k, 0)),    # w0 K-tile
                pl.BlockSpec((3, h1p), lambda i, k: (0, 0)),     # [b0;g0;be0]
                pl.BlockSpec((h1p, h2p), lambda i, k: (0, 0)),   # w1
                pl.BlockSpec((3, h2p), lambda i, k: (0, 0)),     # [b1;g1;be1]
                pl.BlockSpec((h2p, w2), lambda i, k: (0, 0)),    # [wmu|wlv]
                pl.BlockSpec((1, w2), lambda i, k: (0, 0)),      # [bmu|blv]
                pl.BlockSpec((bt, lp), lambda i, k: (i, 0)),     # eps
            ],
            out_specs=pl.BlockSpec((bt, w2), lambda i, k: (i, 0)),
            scratch_shapes=[pltpu.VMEM((bt, h1p), jnp.float32)],  # x@W0 accum
        ),
        compiler_params=pltpu.CompilerParams(
            dimension_semantics=("parallel", "arbitrary"),
            vmem_limit_bytes=int(budget),
        ),
    )(x_p, w0, params["aff0"], params["w1"], params["aff1"],
      params["wmulv"], params["bmulv"], eps_p)

    z = out[:B, :L]
    kl = jnp.mean(out[:B, lp])     # per-row KL lives in column Lp; batch mean here
    return z, kl


def init_raw_params(key, dims, num_species):
    """Raw (unpadded) parameters mirroring Encoder.__init__.

    hidden0/hidden1 Linear weights: kaiming_normal (std = sqrt(2 / fan_in));
    mu/lnVar Linear: torch default uniform(+-1/sqrt(fan_in)); LayerNorm
    weight=1, bias=0.  Weights stored pre-transposed as (in, out)."""
    d_in = dims[0] + num_species
    h1, h2, lat = dims[1], dims[2], dims[3]
    ks = jax.random.split(key, 8)

    def kaiming(k, fi, fo):
        return jax.random.normal(k, (fi, fo), jnp.float32) * jnp.sqrt(2.0 / fi)

    def uni(k, shape, fi):
        b = 1.0 / jnp.sqrt(fi)
        return jax.random.uniform(k, shape, jnp.float32, -b, b)

    return {
        "w0": kaiming(ks[0], d_in, h1), "b0": uni(ks[1], (h1,), d_in),
        "g0": jnp.ones((h1,), jnp.float32), "be0": jnp.zeros((h1,), jnp.float32),
        "w1": kaiming(ks[2], h1, h2), "b1": uni(ks[3], (h2,), h1),
        "g1": jnp.ones((h2,), jnp.float32), "be1": jnp.zeros((h2,), jnp.float32),
        "wmu": uni(ks[4], (h2, lat), h2), "bmu": uni(ks[5], (lat,), h2),
        "wlv": uni(ks[6], (h2, lat), h2), "blv": uni(ks[7], (lat,), h2),
    }


def pack_params(raw, weight_dtype=jnp.bfloat16):
    """Pack + lane-pad parameters for the kernel.

    h1/h2/latent are zero-padded up to multiples of 128; padded bias/gamma/beta
    are zero so the masked LayerNorm in the kernel reproduces the unpadded
    module exactly."""
    h1 = raw["w0"].shape[1]
    h2 = raw["w1"].shape[1]
    lat = raw["wmu"].shape[1]
    h1p, h2p, lp = _round_up(h1, 128), _round_up(h2, 128), _round_up(lat, 128)

    def padw(w, rp, cp):
        r, c = w.shape
        return jnp.pad(w, ((0, rp - r), (0, cp - c)))

    def padv(v, n):
        return jnp.pad(v, (0, n - v.shape[0]))

    return {
        "w0": padw(raw["w0"], raw["w0"].shape[0], h1p).astype(weight_dtype),
        "aff0": jnp.stack([padv(raw["b0"], h1p), padv(raw["g0"], h1p),
                           padv(raw["be0"], h1p)]).astype(jnp.float32),
        "w1": padw(raw["w1"], h1p, h2p).astype(weight_dtype),
        "aff1": jnp.stack([padv(raw["b1"], h2p), padv(raw["g1"], h2p),
                           padv(raw["be1"], h2p)]).astype(jnp.float32),
        "wmulv": jnp.concatenate([padw(raw["wmu"], h2p, lp),
                                  padw(raw["wlv"], h2p, lp)],
                                 axis=1).astype(weight_dtype),
        "bmulv": jnp.concatenate([padv(raw["bmu"], lp),
                                  padv(raw["blv"], lp)])[None, :].astype(jnp.float32),
        "h1": h1, "h2": h2, "latent": lat,
    }


def ref_forward(x, raw, eps):
    """Pure-JAX reference on the raw (unpadded) params, same bf16 matmul path."""
    bf = jnp.bfloat16

    def block(h_lin, b, g, be):
        h = h_lin + b[None, :]
        m = jnp.mean(h, -1, keepdims=True)
        v = jnp.mean((h - m) ** 2, -1, keepdims=True)
        h = (h - m) * jax.lax.rsqrt(v + LN_EPS) * g[None, :] + be[None, :]
        return jnp.maximum(h, 0.0)

    h = block(jnp.dot(x.astype(bf), raw["w0"].astype(bf),
                      preferred_element_type=jnp.float32),
              raw["b0"], raw["g0"], raw["be0"])
    h = block(jnp.dot(h.astype(bf), raw["w1"].astype(bf),
                      preferred_element_type=jnp.float32),
              raw["b1"], raw["g1"], raw["be1"])
    mean = jnp.dot(h.astype(bf), raw["wmu"].astype(bf),
                   preferred_element_type=jnp.float32) + raw["bmu"][None, :]
    lnvar = jnp.dot(h.astype(bf), raw["wlv"].astype(bf),
                    preferred_element_type=jnp.float32) + raw["blv"][None, :]
    s = jnp.exp(0.5 * lnvar)
    z = s * eps + mean
    kl = jnp.mean(0.5 * jnp.sum(mean * mean + s * s - lnvar - 1.0, axis=1))
    return z, kl


if __name__ == "__main__":
    # Small shapes consistent with the module: dims = [genes, h1, h2, latent]
    dims = [28, 64, 32, 16]
    num_species = 4
    batch = 16

    key = jax.random.PRNGKey(0)
    k_param, k_x, k_eps = jax.random.split(key, 3)

    raw = init_raw_params(k_param, dims, num_species)
    params = pack_params(raw)
    x = jax.random.normal(k_x, (batch, dims[0] + num_species), jnp.float32)
    eps = jax.random.normal(k_eps, (batch, dims[3]), jnp.float32)  # randn_like

    # batch=16 -> 2 batch tiles of 8, exercising the parallel grid axis.
    z, kl = encoder_forward(x, params, eps)
    jax.block_until_ready((z, kl))

    zr, klr = ref_forward(x, raw, eps)
    assert z.shape == (batch, dims[3]), "bad latent shape"
    assert jnp.allclose(z, zr, atol=2e-3, rtol=2e-3), "latent mismatch"
    assert jnp.allclose(kl, klr, atol=2e-3, rtol=2e-3), "KL mismatch"

    print("KERNEL_OK")
</pallas_src>

<mosaic_0001>
module attributes {stable_mosaic.version = 11 : i64} {
  func.func @_encoder_kernel(%arg0: i32, %arg1: i32, %arg2: memref<8x32xbf16, #tpu.memory_space<vmem>>, %arg3: memref<32x128xbf16, #tpu.memory_space<vmem>>, %arg4: memref<3x128xf32, #tpu.memory_space<vmem>>, %arg5: memref<128x128xbf16, #tpu.memory_space<vmem>>, %arg6: memref<3x128xf32, #tpu.memory_space<vmem>>, %arg7: memref<128x256xbf16, #tpu.memory_space<vmem>>, %arg8: memref<1x256xf32, #tpu.memory_space<vmem>>, %arg9: memref<8x128xf32, #tpu.memory_space<vmem>>, %arg10: memref<8x256xf32, #tpu.memory_space<vmem>>, %arg11: memref<8x128xf32, #tpu.memory_space<vmem>>) attributes {dimension_semantics = [#tpu.dimension_semantics<parallel>, #tpu.dimension_semantics<arbitrary>], iteration_bounds = array<i64: 2, 1>, scalar_prefetch = 0 : i64, scratch_operands = 1 : i64, tpu.core_type = #tpu.core_type<tc>, window_params = [{transform_indices = @transform_0, window_bounds = array<i64: 8, 32>}, {transform_indices = @transform_1, window_bounds = array<i64: 32, 128>}, {pipeline_mode = #tpu.pipeline_mode<synchronous>, transform_indices = @transform_2, window_bounds = array<i64: 3, 128>}, {pipeline_mode = #tpu.pipeline_mode<synchronous>, transform_indices = @transform_3, window_bounds = array<i64: 128, 128>}, {pipeline_mode = #tpu.pipeline_mode<synchronous>, transform_indices = @transform_4, window_bounds = array<i64: 3, 128>}, {pipeline_mode = #tpu.pipeline_mode<synchronous>, transform_indices = @transform_5, window_bounds = array<i64: 128, 256>}, {pipeline_mode = #tpu.pipeline_mode<synchronous>, transform_indices = @transform_6, window_bounds = array<i64: 1, 256>}, {transform_indices = @transform_7, window_bounds = array<i64: 8, 128>}, {transform_indices = @transform_8, window_bounds = array<i64: 8, 256>}]} {
    %c0 = arith.constant 0 : index
    %c0_0 = arith.constant 0 : index
    %0 = vector.load %arg2[%c0, %c0_0] : memref<8x32xbf16, #tpu.memory_space<vmem>>, vector<8x32xbf16>
    %c0_1 = arith.constant 0 : index
    %c0_2 = arith.constant 0 : index
    %1 = vector.load %arg3[%c0_1, %c0_2] : memref<32x128xbf16, #tpu.memory_space<vmem>>, vector<32x128xbf16>
    %cst = arith.constant dense<0.000000e+00> : vector<8x128xf32>
    %2 = tpu.matmul %0, %1, %cst {dimension_numbers = #tpu.dot_dimension_numbers<[1], [0], [0], [1], [0, 0, 1, 1], [], []>} : vector<8x32xbf16>, vector<32x128xbf16>, vector<8x128xf32> -> vector<8x128xf32>
    %c0_i32 = arith.constant 0 : i32
    %3 = arith.cmpi eq, %arg1, %c0_i32 : i32
    %4 = arith.extui %3 : i1 to i32
    %c0_i32_3 = arith.constant 0 : i32
    %5 = arith.cmpi ne, %4, %c0_i32_3 : i32
    scf.if %5 {
      %c0_8 = arith.constant 0 : index
      %c0_9 = arith.constant 0 : index
      %12 = vector.load %arg11[%c0_8, %c0_9] : memref<8x128xf32, #tpu.memory_space<vmem>>, vector<8x128xf32>
      tpu.vector_store %arg11[%c0_8, %c0_9], %2 {strides = array<i32>} : memref<8x128xf32, #tpu.memory_space<vmem>>, vector<8x128xf32>,
    } else {
    }
    %c0_i32_4 = arith.constant 0 : i32
    %6 = arith.cmpi sgt, %arg1, %c0_i32_4 : i32
    %7 = arith.extui %6 : i1 to i32
    %c0_i32_5 = arith.constant 0 : i32
    %8 = arith.cmpi ne, %7, %c0_i32_5 : i32
    scf.if %8 {
      %c0_8 = arith.constant 0 : index
      %c0_9 = arith.constant 0 : index
      %12 = vector.load %arg11[%c0_8, %c0_9] : memref<8x128xf32, #tpu.memory_space<vmem>>, vector<8x128xf32>
      %13 = arith.addf %12, %2 : vector<8x128xf32>
      %c0_10 = arith.constant 0 : index
      %c0_11 = arith.constant 0 : index
      %14 = vector.load %arg11[%c0_10, %c0_11] : memref<8x128xf32, #tpu.memory_space<vmem>>, vector<8x128xf32>
      tpu.vector_store %arg11[%c0_10, %c0_11], %13 {strides = array<i32>} : memref<8x128xf32, #tpu.memory_space<vmem>>, vector<8x128xf32>,
    } else {
    }
    %c0_i32_6 = arith.constant 0 : i32
    %9 = arith.cmpi eq, %arg1, %c0_i32_6 : i32
    %10 = arith.extui %9 : i1 to i32
    %c0_i32_7 = arith.constant 0 : i32
    %11 = arith.cmpi ne, %10, %c0_i32_7 : i32
    scf.if %11 {
      %c0_8 = arith.constant 0 : index
      %c0_9 = arith.constant 0 : index
      %12 = vector.load %arg11[%c0_8, %c0_9] : memref<8x128xf32, #tpu.memory_space<vmem>>, vector<8x128xf32>
      %c0_10 = arith.constant 0 : index
      %c0_11 = arith.constant 0 : index
      %13 = vector.load %arg4[%c0_10, %c0_11] : memref<3x128xf32, #tpu.memory_space<vmem>>, vector<3x128xf32>
      %14 = vector.extract_strided_slice %13 {offsets = [0, 0], sizes = [1, 128], strides = [1, 1]} : vector<3x128xf32> to vector<1x128xf32>
      %15 = vector.broadcast %14 : vector<1x128xf32> to vector<8x128xf32>
      %16 = arith.addf %12, %15 : vector<8x128xf32>
      %17 = tpu.iota {dimensions = array<i32: 1>} : vector<8x128xi32>
      %cst_12 = arith.constant dense<0.000000e+00> : vector<8xf32>
      %18 = vector.multi_reduction <add>, %16, %cst_12 [1] : vector<8x128xf32> to vector<8xf32>
      %19 = vector.shape_cast %18 : vector<8xf32> to vector<8x1xf32>
      %cst_13 = arith.constant 1.562500e-02 : f32
      %20 = vector.broadcast %cst_13 : f32 to vector<8x1xf32>
      %21 = arith.mulf %19, %20 : vector<8x1xf32>
      %c64_i32 = arith.constant 64 : i32
      %22 = vector.broadcast %c64_i32 : i32 to vector<8x128xi32>
      %23 = arith.cmpi slt, %17, %22 : vector<8x128xi32>
      %24 = vector.broadcast %21 : vector<8x1xf32> to vector<8x128xf32>
      %25 = arith.subf %16, %24 : vector<8x128xf32>
      %cst_14 = arith.constant 0.000000e+00 : f32
      %26 = vector.broadcast %cst_14 : f32 to vector<8x128xf32>
      %27 = arith.select %23, %25, %26 : vector<8x128xi1>, vector<8x128xf32>
      %28 = arith.mulf %27, %27 : vector<8x128xf32>
      %cst_15 = arith.constant dense<0.000000e+00> : vector<8xf32>
      %29 = vector.multi_reduction <add>, %28, %cst_15 [1] : vector<8x128xf32> to vector<8xf32>
      %30 = vector.shape_cast %29 : vector<8xf32> to vector<8x1xf32>
      %cst_16 = arith.constant 1.562500e-02 : f32
      %31 = vector.broadcast %cst_16 : f32 to vector<8x1xf32>
      %32 = arith.mulf %30, %31 : vector<8x1xf32>
      %cst_17 = arith.constant 9.99999974E-6 : f32
      %33 = vector.broadcast %cst_17 : f32 to vector<8x1xf32>
      %34 = arith.addf %32, %33 : vector<8x1xf32>
      %35 = math.rsqrt %34 : vector<8x1xf32>
      %36 = vector.broadcast %35 : vector<8x1xf32> to vector<8x128xf32>
      %37 = arith.mulf %27, %36 : vector<8x128xf32>
      %38 = vector.extract_strided_slice %13 {offsets = [1, 0], sizes = [1, 128], strides = [1, 1]} : vector<3x128xf32> to vector<1x128xf32>
      %39 = vector.broadcast %38 : vector<1x128xf32> to vector<8x128xf32>
      %40 = arith.mulf %37, %39 : vector<8x128xf32>
      %41 = vector.extract_strided_slice %13 {offsets = [2, 0], sizes = [1, 128], strides = [1, 1]} : vector<3x128xf32> to vector<1x128xf32>
      %42 = vector.broadcast %41 : vector<1x128xf32> to vector<8x128xf32>
      %43 = arith.addf %40, %42 : vector<8x128xf32>
      %cst_18 = arith.constant 0.000000e+00 : f32
      %44 = vector.broadcast %cst_18 : f32 to vector<8x128xf32>
      %45 = arith.maximumf %43, %44 : vector<8x128xf32>
      %46 = arith.truncf %45 : vector<8x128xf32> to vector<8x128xbf16>
      %c0_19 = arith.constant 0 : index
      %c0_20 = arith.constant 0 : index
      %47 = vector.load %arg5[%c0_19, %c0_20] : memref<128x128xbf16, #tpu.memory_space<vmem>>, vector<128x128xbf16>
      %cst_21 = arith.constant dense<0.000000e+00> : vector<8x128xf32>
      %48 = tpu.matmul %46, %47, %cst_21 {dimension_numbers = #tpu.dot_dimension_numbers<[1], [0], [0], [1], [0, 0, 1, 1], [], []>} : vector<8x128xbf16>, vector<128x128xbf16>, vector<8x128xf32> -> vector<8x128xf32>
      %c0_22 = arith.constant 0 : index
      %c0_23 = arith.constant 0 : index
      %49 = vector.load %arg6[%c0_22, %c0_23] : memref<3x128xf32, #tpu.memory_space<vmem>>, vector<3x128xf32>
      %50 = vector.extract_strided_slice %49 {offsets = [0, 0], sizes = [1, 128], strides = [1, 1]} : vector<3x128xf32> to vector<1x128xf32>
      %51 = vector.broadcast %50 : vector<1x128xf32> to vector<8x128xf32>
      %52 = arith.addf %48, %51 : vector<8x128xf32>
      %53 = tpu.iota {dimensions = array<i32: 1>} : vector<8x128xi32>
      %cst_24 = arith.constant dense<0.000000e+00> : vector<8xf32>
      %54 = vector.multi_reduction <add>, %52, %cst_24 [1] : vector<8x128xf32> to vector<8xf32>
      %55 = vector.shape_cast %54 : vector<8xf32> to vector<8x1xf32>
      %cst_25 = arith.constant 3.125000e-02 : f32
      %56 = vector.broadcast %cst_25 : f32 to vector<8x1xf32>
      %57 = arith.mulf %55, %56 : vector<8x1xf32>
      %c32_i32 = arith.constant 32 : i32
      %58 = vector.broadcast %c32_i32 : i32 to vector<8x128xi32>
      %59 = arith.cmpi slt, %53, %58 : vector<8x128xi32>
      %60 = vector.broadcast %57 : vector<8x1xf32> to vector<8x128xf32>
      %61 = arith.subf %52, %60 : vector<8x128xf32>
      %cst_26 = arith.constant 0.000000e+00 : f32
      %62 = vector.broadcast %cst_26 : f32 to vector<8x128xf32>
      %63 = arith.select %59, %61, %62 : vector<8x128xi1>, vector<8x128xf32>
      %64 = arith.mulf %63, %63 : vector<8x128xf32>
      %cst_27 = arith.constant dense<0.000000e+00> : vector<8xf32>
      %65 = vector.multi_reduction <add>, %64, %cst_27 [1] : vector<8x128xf32> to vector<8xf32>
      %66 = vector.shape_cast %65 : vector<8xf32> to vector<8x1xf32>
      %cst_28 = arith.constant 3.125000e-02 : f32
      %67 = vector.broadcast %cst_28 : f32 to vector<8x1xf32>
      %68 = arith.mulf %66, %67 : vector<8x1xf32>
      %cst_29 = arith.constant 9.99999974E-6 : f32
      %69 = vector.broadcast %cst_29 : f32 to vector<8x1xf32>
      %70 = arith.addf %68, %69 : vector<8x1xf32>
      %71 = math.rsqrt %70 : vector<8x1xf32>
      %72 = vector.broadcast %71 : vector<8x1xf32> to vector<8x128xf32>
      %73 = arith.mulf %63, %72 : vector<8x128xf32>
      %74 = vector.extract_strided_slice %49 {offsets = [1, 0], sizes = [1, 128], strides = [1, 1]} : vector<3x128xf32> to vector<1x128xf32>
      %75 = vector.broadcast %74 : vector<1x128xf32> to vector<8x128xf32>
      %76 = arith.mulf %73, %75 : vector<8x128xf32>
      %77 = vector.extract_strided_slice %49 {offsets = [2, 0], sizes = [1, 128], strides = [1, 1]} : vector<3x128xf32> to vector<1x128xf32>
      %78 = vector.broadcast %77 : vector<1x128xf32> to vector<8x128xf32>
      %79 = arith.addf %76, %78 : vector<8x128xf32>
      %cst_30 = arith.constant 0.000000e+00 : f32
      %80 = vector.broadcast %cst_30 : f32 to vector<8x128xf32>
      %81 = arith.maximumf %79, %80 : vector<8x128xf32>
      %82 = arith.truncf %81 : vector<8x128xf32> to vector<8x128xbf16>
      %c0_31 = arith.constant 0 : index
      %c0_32 = arith.constant 0 : index
      %83 = vector.load %arg7[%c0_31, %c0_32] : memref<128x256xbf16, #tpu.memory_space<vmem>>, vector<128x256xbf16>
      %cst_33 = arith.constant dense<0.000000e+00> : vector<8x256xf32>
      %84 = tpu.matmul %82, %83, %cst_33 {dimension_numbers = #tpu.dot_dimension_numbers<[1], [0], [0], [1], [0, 0, 1, 1], [], []>} : vector<8x128xbf16>, vector<128x256xbf16>, vector<8x256xf32> -> vector<8x256xf32>
      %c0_34 = arith.constant 0 : index
      %c0_35 = arith.constant 0 : index
      %85 = vector.load %arg8[%c0_34, %c0_35] : memref<1x256xf32, #tpu.memory_space<vmem>>, vector<1x256xf32>
      %86 = vector.broadcast %85 : vector<1x256xf32> to vector<8x256xf32>
      %87 = arith.addf %84, %86 : vector<8x256xf32>
      %88 = vector.extract_strided_slice %87 {offsets = [0, 0], sizes = [8, 128], strides = [1, 1]} : vector<8x256xf32> to vector<8x128xf32>
      %89 = vector.extract_strided_slice %87 {offsets = [0, 128], sizes = [8, 128], strides = [1, 1]} : vector<8x256xf32> to vector<8x128xf32>
      %cst_36 = arith.constant 5.000000e-01 : f32
      %90 = vector.broadcast %cst_36 : f32 to vector<8x128xf32>
      %91 = arith.mulf %90, %89 : vector<8x128xf32>
      %92 = math.exp %91 : vector<8x128xf32>
      %c0_37 = arith.constant 0 : index
      %c0_38 = arith.constant 0 : index
      %93 = vector.load %arg9[%c0_37, %c0_38] : memref<8x128xf32, #tpu.memory_space<vmem>>, vector<8x128xf32>
      %94 = arith.mulf %92, %93 : vector<8x128xf32>
      %95 = arith.addf %94, %88 : vector<8x128xf32>
      %96 = arith.mulf %88, %88 : vector<8x128xf32>
      %97 = arith.mulf %92, %92 : vector<8x128xf32>
      %98 = arith.addf %96, %97 : vector<8x128xf32>
      %99 = arith.subf %98, %89 : vector<8x128xf32>
      %cst_39 = arith.constant 1.000000e+00 : f32
      %100 = vector.broadcast %cst_39 : f32 to vector<8x128xf32>
      %101 = arith.subf %99, %100 : vector<8x128xf32>
      %cst_40 = arith.constant dense<0.000000e+00> : vector<8xf32>
      %102 = vector.multi_reduction <add>, %101, %cst_40 [1] : vector<8x128xf32> to vector<8xf32>
      %103 = vector.shape_cast %102 : vector<8xf32> to vector<8x1xf32>
      %cst_41 = arith.constant 5.000000e-01 : f32
      %104 = vector.broadcast %cst_41 : f32 to vector<8x1xf32>
      %105 = arith.mulf %104, %103 : vector<8x1xf32>
      %106 = vector.shape_cast %105 : vector<8x1xf32> to vector<8x1xf32>
      %107 = vector.broadcast %106 : vector<8x1xf32> to vector<8x128xf32>
      %108 = tpu.concatenate %95, %107 in 1 : vector<8x128xf32>, vector<8x128xf32> -> vector<8x256xf32>
      %c0_42 = arith.constant 0 : index
      %c0_43 = arith.constant 0 : index
      %109 = vector.load %arg10[%c0_42, %c0_43] : memref<8x256xf32, #tpu.memory_space<vmem>>, vector<8x256xf32>
      tpu.vector_store %arg10[%c0_42, %c0_43], %108 {strides = array<i32>} : memref<8x256xf32, #tpu.memory_space<vmem>>, vector<8x256xf32>,
    } else {
    }
    return
  }
  func.func @transform_0(%arg0: i32, %arg1: i32) -> (i32, i32) {
    %c0_i32 = arith.constant 0 : i32
    return %arg0, %arg1 : i32, i32
  }
  func.func @transform_1(%arg0: i32, %arg1: i32) -> (i32, i32) {
    %c0_i32 = arith.constant 0 : i32
    %c0_i32_0 = arith.constant 0 : i32
    return %arg1, %c0_i32 : i32, i32
  }
  func.func @transform_2(%arg0: i32, %arg1: i32) -> (i32, i32) {
    %c0_i32 = arith.constant 0 : i32
    %c0_i32_0 = arith.constant 0 : i32
    %c0_i32_1 = arith.constant 0 : i32
    return %c0_i32, %c0_i32_0 : i32, i32
  }
  func.func @transform_3(%arg0: i32, %arg1: i32) -> (i32, i32) {
    %c0_i32 = arith.constant 0 : i32
    %c0_i32_0 = arith.constant 0 : i32
    %c0_i32_1 = arith.constant 0 : i32
    return %c0_i32, %c0_i32_0 : i32, i32
  }
  func.func @transform_4(%arg0: i32, %arg1: i32) -> (i32, i32) {
    %c0_i32 = arith.constant 0 : i32
    %c0_i32_0 = arith.constant 0 : i32
    %c0_i32_1 = arith.constant 0 : i32
    return %c0_i32, %c0_i32_0 : i32, i32
  }
  func.func @transform_5(%arg0: i32, %arg1: i32) -> (i32, i32) {
    %c0_i32 = arith.constant 0 : i32
    %c0_i32_0 = arith.constant 0 : i32
    %c0_i32_1 = arith.constant 0 : i32
    return %c0_i32, %c0_i32_0 : i32, i32
  }
  func.func @transform_6(%arg0: i32, %arg1: i32) -> (i32, i32) {
    %c0_i32 = arith.constant 0 : i32
    %c0_i32_0 = arith.constant 0 : i32
    %c0_i32_1 = arith.constant 0 : i32
    return %c0_i32, %c0_i32_0 : i32, i32
  }
  func.func @transform_7(%arg0: i32, %arg1: i32) -> (i32, i32) {
    %c0_i32 = arith.constant 0 : i32
    %c0_i32_0 = arith.constant 0 : i32
    return %arg0, %c0_i32 : i32, i32
  }
  func.func @transform_8(%arg0: i32, %arg1: i32) -> (i32, i32) {
    %c0_i32 = arith.constant 0 : i32
    %c0_i32_0 = arith.constant 0 : i32
    return %arg0, %c0_i32 : i32, i32
  }
}

</mosaic_0001>

<bundles_post_ra>
// kernel: tpu_custom_call.1
= control target key start
LH: loop header
LB: loop body
LE: loop exit
PB: predicated region body
PF: predicated region fallthrough
CT: control target
= control target key end

     0   :  { %s1816_s0 = inlined_call_operand.hbm [shape: bf16[16,32], index: 0, kind: input, shape index: {}]   ;;  %s1817_s1 = inlined_call_operand.hbm [shape: bf16[32,128], index: 1, kind: input, shape index: {}]   ;;  %s1818_s2 = inlined_call_operand.hbm [shape: f32[3,128], index: 2, kind: input, shape index: {}]   ;;  %s1819_s3 = inlined_call_operand.hbm [shape: bf16[128,128], index: 3, kind: input, shape index: {}]   ;;  %s1820_s4 = inlined_call_operand.vmem [shape: f32[3,128], index: 4, kind: input, shape index: {}]   ;;  %s1821_s5 = inlined_call_operand.hbm [shape: bf16[128,256], index: 5, kind: input, shape index: {}]   ;;  %s1822_s6 = inlined_call_operand.vmem [shape: f32[1,256], index: 6, kind: input, shape index: {}]   ;;  %s1823_s7 = inlined_call_operand.hbm [shape: f32[16,128], index: 7, kind: input, shape index: {}]   ;;  %s1824_s8 = inlined_call_operand.hbm [shape: f32[16,256], index: 8, kind: output, shape index: {}]  }
   0x1   :  { %1828 = sst [smem:[#allocation23_spill]] %s1816_s0 }
   0x2   :  { %1829 = sst [smem:[#allocation24_spill]] %s1817_s1 }
   0x3   :  { %1830 = sst [smem:[#allocation25_spill]] %s1818_s2 }
   0x4   :  { %1831 = sst [smem:[#allocation26_spill]] %s1819_s3 }
   0x5   :  { %1832 = sst [smem:[#allocation27_spill]] %s1821_s5 }
   0x6   :  { %13 = vsyncpa [#allocation4], 0 }
   0x7   :  { %15 = vsyncpa [#allocation4 + $0x1], 0 }
   0x8   :  { %16 = vsyncpa [#allocation7], 0 }
   0x9   :  { %17 = vsyncpa [#allocation10], 0 }
   0xa   :  { %18 = vsyncpa [#allocation13], 0 }
   0xb   :  { %20 = vsyncpa [#allocation13 + $0x1], 0 }
   0xc   :  { %21 = vsyncpa [#allocation5], 0 }
   0xd   :  { %23 = vsyncpa [#allocation5 + $0x1], 0  ;;  %s1567_s27 = smov 0   ;;  %s1569_s28 = smov 0  }
   0xe   :  { %s1571_s29 = smov 0   ;;  %s1573_s30 = smov 0  }
   0xf   :  { %s1575_s9 = smov 0   ;;  %s1577_s10 = smov 0  }
  0x10 LB: > { %1833 = sst [smem:[#allocation20_spill]] %s1494_s29  ;;  %s1005_s11 = sadd.s32 4294967295, %s1506_s10   ;;  %s1506_s10 = sphi %s1577_s10, %s29_s10   ;;  %s1502_s9 = sphi %s1575_s9, %s1857_s9   ;;  %s1498_s30 = sphi %s1573_s30, %s1856_s30   ;;  %s1494_s29 = sphi %s1571_s29, %s1852_s29   ;;  %s1490_s28 = sphi %s1569_s28, %s1855_s28   ;;  %s1486_s27 = sphi %s1567_s27, %s1854_s27  }
  0x11   : > { %p1007_p0 = scmp.ge.s32.totalorder %s1506_s10, 1  ;;  %p1601_p1 = scmp.eq.s32.totalorder %s1005_s11, 0 }
  0x12   : > { %p257_p2 = scmp.lt.s32.totalorder %s1506_s10, 3  ;;  %s1508_s14 = smov [#allocation6]  }
  0x13   : > { %s272_s15 = sshll.u32 %s1508_s14, 4  ;;  %s1509_s17 = smov [#allocation9]   ;;  %s273_s15 = int_to_ptr.vmem [resolvable:$true] %s272_s15 }
  0x14   : > { %p1606_p3 = pnand %p1007_p0, %p257_p2  ;;  %s296_s18 = sshll.u32 %s1509_s17, 4  ;;  %s297_s18 = int_to_ptr.vmem [resolvable:$true] %s296_s18 }
  0x15   : > { %s1510_s19 = smov [#allocation8]   ;;  %s1265_s21 = scalar_lea.vmem %s273_s15, 256 }
  0x16   : > { %s1835_s13 = scalar_select %p1606_p3, 1, 0 }
  0x17   : > { %p1121_p4 = pneg %p1606_p3  ;;  %s286_s20 = sshll.u32 %s1510_s19, 4  ;;  %s287_s20 = int_to_ptr.vmem [resolvable:$true] %s286_s20 }
  0x18   : > { %p1266_p8 = scmp.ne.s32.totalorder %s273_s15, %s1265_s21  ;;  %p1273_p11 = scmp.lt.s32.totalorder %s273_s15, %s273_s15 }
  0x19   : > { %p1615_p6 = pnand %p1121_p4, %p1601_p1  ;;  %p1274_p12 = scmp.lt.s32.totalorder %s1265_s21, %s1265_s21 }
  0x1b   : > { %p1256_p7 = pneg %p1615_p6  ;;  %p1275_p13 = por %p1274_p12, %p1273_p11 }
  0x1d   : > { %p1268_p9 = pnand %p1266_p8, %p1256_p7 }
  0x1f   : > { %p1269_p10 = pneg %p1268_p9 }
  0x21   : > { %p1276_p0 = pnand %p1275_p13, %p1269_p10 }
  0x23   : > { %1279 = shalt.err (!%p1276_p0)
}
  0x24   : > { %s1511_s22 = smov 64   ;;  %s1512_s23 = smov 4  }
  0x25   : > { %s1837_s1 = sld [smem:[#allocation24_spill]]  ;;  %s1291_s26 = scalar_lea.vmem %s297_s18, 1024 }
  0x26   : > { %p1292_p2 = scmp.ne.s32.totalorder %s297_s18, %s1291_s26  ;;  %p1299_p9 = scmp.lt.s32.totalorder %s297_s18, %s297_s18 }
  0x27   : > { %p1300_p5 = scmp.lt.s32.totalorder %s1291_s26, %s1291_s26 }
  0x28   : > { %p1294_p4 = pnand %p1292_p2, %p1256_p7 }
  0x29   : > { %p1301_p11 = por %p1300_p5, %p1299_p9 }
  0x2a   : > { %p1295_p8 = pneg %p1294_p4 }
  0x2b   : > { %1124 = dma.hbm_to_vmem [thread:$0]  (!%p1615_p6), %s1837_s1, 256, %s273_s15, [#allocation7], %s1511_s22, %s1511_s22, %s1512_s23  }
  0x2c   : > { %p1302_p10 = pnand %p1301_p11, %p1295_p8 }
  0x2e   : > { %1305 = shalt.err (!%p1302_p10)
}
  0x2f   : > { %s1838_s3 = sld [smem:[#allocation26_spill]]  ;;  %s1317_s15 = scalar_lea.vmem %s287_s20, 64 }
  0x30   : > { %p1318_p12 = scmp.ne.s32.totalorder %s287_s20, %s1317_s15  ;;  %p1325_p2 = scmp.lt.s32.totalorder %s287_s20, %s287_s20 }
  0x31   : > { %p1326_p4 = scmp.lt.s32.totalorder %s1317_s15, %s1317_s15 }
  0x32   : > { %p1320_p13 = pnand %p1318_p12, %p1256_p7 }
  0x33   : > { %p1327_p3 = por %p1326_p4, %p1325_p2 }
  0x34   : > { %p1321_p0 = pneg %p1320_p13 }
  0x35   : > { %1130 = dma.hbm_to_vmem [thread:$0]  (!%p1615_p6), %s1838_s3, 1024, %s297_s18, [#allocation10], %s1511_s22, %s1511_s22, %s1512_s23  }
  0x36   : > { %p1328_p5 = pnand %p1327_p3, %p1321_p0 }
  0x38   : > { %1331 = shalt.err (!%p1328_p5)
}
  0x39   : > { %s1839_s2 = sld [smem:[#allocation25_spill]]  ;;  %s1513_s18 = smov [#allocation11]  }
  0x3a   : > { %s312_s22 = sshll.u32 %s1513_s18, 4  ;;  %s313_s22 = int_to_ptr.vmem [resolvable:$true] %s312_s22 }
  0x3b   : > { %s1343_s23 = scalar_lea.vmem %s313_s22, 2048  ;;  %p1351_p10 = scmp.lt.s32.totalorder %s313_s22, %s313_s22 }
  0x3c   : > { %p1344_p8 = scmp.ne.s32.totalorder %s313_s22, %s1343_s23  ;;  %p1352_p12 = scmp.lt.s32.totalorder %s1343_s23, %s1343_s23 }
  0x3e   : > { %p1346_p9 = pnand %p1344_p8, %p1256_p7  ;;  %p1353_p3 = por %p1352_p12, %p1351_p10 }
  0x3f   : > { %1127 = dma.hbm_to_vmem [thread:$0]  (!%p1615_p6), %s1839_s2, 64, %s287_s20, [#allocation7]  }
  0x40   : > { %p1347_p11 = pneg %p1346_p9 }
  0x42   : > { %p1354_p13 = pnand %p1353_p3, %p1347_p11 }
  0x44   : > { %1357 = shalt.err (!%p1354_p13)
}
  0x45   : > { %s1514_s24 = smov 128   ;;  %s1515_s20 = smov 8  }
  0x46   : > { %s1840_s5 = sld [smem:[#allocation27_spill]]  ;;  %s1006_s14 = sadd.s32 4294967294, %s1506_s10  }
  0x47   : > { %s41_s17 = sadd.s32 1, %s1502_s9  ;;  %s50_s15 = sadd.s32 1, %s1494_s29 }
  0x48   : > { %p43_p7 = scmp.ge.s32.totalorder %s41_s17, 2  ;;  %p57_p0 = scmp.ne.s32.totalorder %s1494_s29, %s1490_s28 }
  0x49   : > { %p58_p2 = scmp.eq.s32.totalorder %s1506_s10, 0  ;;  %p63_p5 = scmp.ne.s32.totalorder %s1490_s28, %s1486_s27 }
  0x4a   : > { %s1859_s17 = smov (%p43_p7, %s41_s17), 0  ;;  %p250_p10 = scmp.eq.s32.totalorder %s1006_s14, 1 }
  0x4b   : > { %1841 = sst [smem:[#allocation21_spill]] %s1859_s17  ;;  %p1661_p4 = por %p58_p2, %p57_p0 }
  0x4c   : > { %1133 = dma.hbm_to_vmem [thread:$0]  (!%p1615_p6), %s1840_s5, 2048, %s313_s22, [#allocation10], %s1514_s24, %s1514_s24, %s1515_s20  }
  0x4d   : > { %s45_s16 = ssub.s32 %s1502_s9, %s1859_s17  ;;  %p244_p6 = scmp.eq.s32.totalorder %s1005_s11, 1 }
  0x4e   : > { %p48_p8 = scmp.eq.s32.totalorder %s45_s16, 0  ;;  %p1673_p9 = por %p1601_p1, %p63_p5 }
  0x4f   : > { %p1677_p11 = por %p244_p6, %p57_p0  ;;  %p1684_p12 = por %p250_p10, %p63_p5 }
  0x50   : > { %s1682_s22 = scalar_select %p48_p8, %s1494_s29, %s50_s15  }
  0x51   : > { %p1149_p3 = scmp.lt.s32.totalorder %s1506_s10, 2  ;;  %s1690_s24 = sand.u32 1, %s1494_s29  }
  0x52   : > { %1845 = sst [smem:[#allocation22_spill]] %s1682_s22  ;;  %s1014_s11 = sshll.u32 %s1502_s9, 6 }
  0x53   : > { %s1013_s20 = sshll.u32 %s1690_s24, 2  ;;  %s1847_s0 = sld [smem:[#allocation23_spill]] }
  0x54   : > { %s333_s1 = scalar_lea.vmem [#allocation3], %s1013_s20  ;;  %p1699_p13 = pnand %p1149_p3, %p1661_p4 }
  0x55   : > { %s341_s14 = sshll.u32 %s333_s1, 4  ;;  %s1015_s2 = sshll.u32 %s1690_s24, 3  ;;  %s342_s14 = int_to_ptr.vmem [resolvable:$true] %s341_s14 }
  0x56   : > { %s330_s3 = scalar_lea.sflag [#allocation4], %s1690_s24  ;;  %p1360_p7 = pneg %p1699_p13 }
  0x57   : > { %s1371_s5 = scalar_lea.vmem %s342_s14, 64 }
  0x58   : > { %p1372_p0 = scmp.ne.s32.totalorder %s342_s14, %s1371_s5 }
  0x59   : > { %s339_s16 = scalar_lea.hbm %s1847_s0, %s1014_s11  ;;  %s1516_s11 = smov [#allocation3]  }
  0x5a   : > { %p1374_p2 = pnand %p1372_p0, %p1360_p7  ;;  %s1376_s1 = sshll.u32 %s1516_s11, 4  ;;  %s1377_s1 = int_to_ptr.vmem [resolvable:$false] %s1376_s1 }
  0x5b   : > { %s1378_s19 = scalar_lea.vmem %s1377_s1, 128  ;;  %p1379_p4 = scmp.lt.s32.totalorder %s342_s14, %s1377_s1 }
  0x5c   : > { %p1375_p5 = pneg %p1374_p2  ;;  %p1380_p6 = scmp.lt.s32.totalorder %s1378_s19, %s1371_s5 }
  0x5e   : > { %p1381_p8 = por %p1380_p6, %p1379_p4 }
  0x60   : > { %p1382_p10 = pnand %p1381_p8, %p1375_p5 }
  0x62   : > { %1385 = shalt.err (!%p1382_p10)
}
  0x63   : > { %1137 = dma.hbm_to_vmem [thread:$0]  (!%p1699_p13), %s339_s16, 64, %s342_s14, %s330_s3  }
  0x64   : > { %s1016_s20 = sshll.u32 %s1502_s9, 7  ;;  %s352_s17 = scalar_lea.vmem [#allocation12], %s1015_s2 }
  0x65   : > { %s357_s0 = scalar_lea.hbm %s1823_s7, %s1016_s20  ;;  %s359_s11 = sshll.u32 %s352_s17, 4  ;;  %s360_s11 = int_to_ptr.vmem [resolvable:$true] %s359_s11 }
  0x66   : > { %s349_s22 = scalar_lea.sflag [#allocation13], %s1690_s24  ;;  %s1399_s1 = scalar_lea.vmem %s360_s11, 128 }
  0x67   : > { %p1400_p3 = scmp.ne.s32.totalorder %s360_s11, %s1399_s1  ;;  %s1517_s5 = smov [#allocation12]  }
  0x68   : > { %s1404_s19 = sshll.u32 %s1517_s5, 4  ;;  %s1405_s19 = int_to_ptr.vmem [resolvable:$false] %s1404_s19 }
  0x69   : > { %p1402_p0 = pnand %p1400_p3, %p1360_p7  ;;  %s1406_s29 = scalar_lea.vmem %s1405_s19, 256 }
  0x6a   : > { %p1407_p5 = scmp.lt.s32.totalorder %s360_s11, %s1405_s19  ;;  %p1408_p4 = scmp.lt.s32.totalorder %s1406_s29, %s1399_s1 }
  0x6b   : > { %p1403_p2 = pneg %p1402_p0 }
  0x6c   : > { %p1409_p6 = por %p1408_p4, %p1407_p5 }
  0x6e   : > { %p1410_p8 = pnand %p1409_p6, %p1403_p2 }
  0x70   : > { %1413 = shalt.err (!%p1410_p8)
}
  0x71   : > { %1140 = dma.hbm_to_vmem [thread:$0]  (!%p1699_p13), %s357_s0, 128, %s360_s11, %s349_s22  }
  0x72   : > { %p1849_p10 = scmp.ne.s32.totalorder %s1835_s13, 0 }
  0x73   : > { %s1725_s2 = sand.u32 (!%p1849_p10), 1, %s1490_s28  }
  0x74   : > { %368 = sbr.rel (%p1849_p10) target bundleno = 1527 (0x5f7), region = 52  ;;  %s1018_s3 = sshll.u32 (!%p1849_p10), %s1725_s2, 2 }
  0x75   : > { %s371_s17 = scalar_lea.sflag (!%p1849_p10), [#allocation4], %s1725_s2  ;;  %s374_s24 = scalar_lea.vmem (!%p1849_p10), [#allocation3], %s1018_s3 }
  0x79   : > { %1465 = dma.done.wait (%p1673_p9), %s371_s17, 64  }
  0x7a   : > { %1467 = vsyncadd (%p1673_p9), %s371_s17, 4294967232 }
  0x7b   : > { %1469 = dma.done.wait (%p1601_p1), [#allocation7], 320  }
  0x7c   : > { %1471 = vsyncadd (%p1601_p1), [#allocation7], 4294966976 }
  0x7d   : > { %1473 = dma.done.wait (%p1601_p1), [#allocation10], 3072  }
  0x7e   : > { %1475 = vsyncadd (%p1601_p1), [#allocation10], 4294964224  ;;  %s1023_s0 = sshll.u32 %s1725_s2, 3  ;;  %s396_s29 = scalar_lea.sflag [#allocation13], %s1725_s2 }
  0x7f   : > { %s1743_s13 = scalar_lea.vmem [#allocation12], %s1023_s0 }
  0x80   : > { %1477 = dma.done.wait (%p1673_p9), %s396_s29, 128  }
  0x81   : > { %1479 = vsyncadd (%p1673_p9), %s396_s29, 4294967168  ;;  %v1518_v0 = vmov 0.0   ;;  %vm1519_vm0 = vmmov 0   ;;  %v1214_v1 = vld [vmem:[#allocation6 + $0x8] sm:$0xff]   ;;  %v1215_v2 = vld [vmem:[#allocation6] sm:$0xff]   ;;  %vm456_vm1 = vcmask 261120   ;;  %v517_v4 = vlaneseq }
  0x82   : > { %1071 = vmatprep.subr.bf16.mxu0 %v1518_v0  ;;  %1075 = vmatprep.mubr.msk.bf16.mxu0 %vm1519_vm0, %v1518_v0  ;;  %v439_v3 = vld [vmem:[%s374_s24] sm:$0xf]  ;;  %v516_v7 = vld [vmem:[#allocation8] sm:$0x7]  ;;  %v1217_v21 = vld [vmem:[#allocation9 + $0x30] sm:$0xff]   ;;  %v1520_v62 = vmov 0  }
  0x83   : > { %1079 = vmatprep.subr.bf16.mxu1 %v1518_v0  ;;  %1095 = vmatprep.mubr.msk.bf16.mxu1 %vm1519_vm0, %v1518_v0  ;;  %v1749_v5 = vshrl.u32 %v517_v4, 7  ;;  %v1216_v14 = vld [vmem:[#allocation9 + $0x38] sm:$0xff]   ;;  %v523_v15 = vand.u32 127, %v517_v4  ;;  %v1218_v22 = vld [vmem:[#allocation9 + $0x28] sm:$0xff]   ;;  %v1219_v23 = vld [vmem:[#allocation9 + $0x20] sm:$0xff]   ;;  %s1024_s14 = sshll.u32 %s1725_s2, 4 }
  0x84   : > { %1072 = vmatpush3.bf16.msra.mxu0 %v1214_v1  ;;  %1080 = vmatpush3.bf16.msra.mxu1 %v1216_v14  ;;  %v1220_v24 = vld [vmem:[#allocation9 + $0x18] sm:$0xff]   ;;  %v1221_v25 = vld [vmem:[#allocation9 + $0x10] sm:$0xff]   ;;  %v1222_v26 = vld [vmem:[#allocation9 + $0x8] sm:$0xff]   ;;  %s436_s15 = scalar_lea.vmem [#allocation14], %s1024_s14  ;;  %s1058_s20 = sshll.u32 %s1498_s30, 8 }
  0x85   : > { %1073 = vmatprep.subr.bf16.mxu0 %v1518_v0  ;;  %v1752_v6 = vsub.s32 0, %v1749_v5  ;;  %1081 = vmatprep.subr.bf16.mxu1 %v1518_v0  ;;  %vm527_vm2 = vcmp.lt.s32.totalorder %v523_v15, 64  ;;  %v1223_v27 = vld [vmem:[#allocation9] sm:$0xff]   ;;  %v1756_v31 = vsub.s32 1, %v1749_v5  ;;  %v544_v32 = vsub.s32 2, %v1749_v5  ;;  %s863_s25 = sshll.u32 %s436_s15, 4  ;;  %s861_s1 = scalar_lea.hbm %s1824_s8, %s1058_s20  ;;  %s864_s25 = int_to_ptr.vmem [resolvable:$true] %s863_s25 }
  0x86   : > { %v565_v41 = vld [vmem:[%s1820_s4] sm:$0x7]  ;;  %v1224_v48 = vld [vmem:[#allocation11 + $0x70] ss:$8 sps:$4 sm:$0xff]   ;;  %v1226_v49 = vld [vmem:[#allocation11 + $0x74] ss:$8 sps:$4 sm:$0xff]  }
  0x87   : > { %v520_v8 = vrot.slane %v516_v7, %v1752_v6  ;;  %v540_v33 = vrot.slane %v516_v7, %v1756_v31  ;;  %v545_v36 = vrot.slane %v516_v7, %v544_v32  ;;  %v569_v42 = vrot.slane %v565_v41, %v1752_v6  ;;  %v1229_v55 = vld [vmem:[#allocation11 + $0x64] ss:$8 sps:$4 sm:$0xff]   ;;  %v1227_v56 = vld [vmem:[#allocation11 + $0x60] ss:$8 sps:$4 sm:$0xff]   ;;  %v1232_v57 = vld [vmem:[#allocation11 + $0x54] ss:$8 sps:$4 sm:$0xff]  }
  0x88   : > { %1074 = vmatpush3.bf16.msra.mxu0 %v1215_v2  ;;  %1082 = vmatpush3.bf16.msra.mxu1 %v1217_v21  ;;  %vm661_vm3 = vcmp.lt.s32.totalorder %v523_v15, 32  ;;  %v1230_v58 = vld [vmem:[#allocation11 + $0x50] ss:$8 sps:$4 sm:$0xff]   ;;  %v1235_v59 = vld [vmem:[#allocation11 + $0x44] ss:$8 sps:$4 sm:$0xff]   ;;  %s849_s5 = scalar_lea.sflag [#allocation5], %s1725_s2 }
  0x89   : > { %1083 = vmatprep.subr.bf16.mxu1 %v1518_v0  ;;  %791 = vmatprep.subr.bf16.mxu0 %v1226_v49  ;;  %v1233_v60 = vld [vmem:[#allocation11 + $0x40] ss:$8 sps:$4 sm:$0xff]   ;;  %v1238_v61 = vld [vmem:[#allocation11 + $0x34] ss:$8 sps:$4 sm:$0xff]   ;;  %v1236_v63 = vld [vmem:[#allocation11 + $0x30] ss:$8 sps:$4 sm:$0xff]  }
  0x8a   : > { %v1239_v1 = vld [vmem:[#allocation11 + $0x20] ss:$8 sps:$4 sm:$0xff]   ;;  %v1244_v2 = vld [vmem:[#allocation11 + $0x14] ss:$8 sps:$4 sm:$0xff]   ;;  %v1247_v4 = vld [vmem:[#allocation11 + $0x4] ss:$8 sps:$4 sm:$0xff]  }
  0x8b   : > { %1076 = vmatmul.mubr.msk.bf16.vlgmr.msra.gmra.mxu0 %vm456_vm1, %v439_v3  ;;  %v1242_v3 = vld [vmem:[#allocation11 + $0x10] ss:$8 sps:$4 sm:$0xff]   ;;  %v1245_v7 = vld [vmem:[#allocation11] ss:$8 sps:$4 sm:$0xff]   ;;  %s1414_s19 = scalar_lea.vmem %s864_s25, 256  ;;  %s1521_s3 = smov [#allocation14]  }
  0x8c   : > { %1084 = vmatpush3.bf16.msra.mxu1 %v1218_v22  ;;  %792 = vmatpush1.bf16.msra.mxu0 %v1224_v48  ;;  %p1415_p1 = scmp.ne.s32.totalorder %s864_s25, %s1414_s19  ;;  %s1418_s17 = sshll.u32 %s1521_s3, 4  ;;  %s1419_s17 = int_to_ptr.vmem [resolvable:$false] %s1418_s17 }
  0x8d   : > { %1085 = vmatprep.subr.bf16.mxu1 %v1518_v0  ;;  %793 = vmatprep.subr.bf16.mxu0 %v1229_v55  ;;  %s1420_s24 = scalar_lea.vmem %s1419_s17, 512  ;;  %p1421_p7 = scmp.lt.s32.totalorder %s864_s25, %s1419_s17 }
  0x8e   : > { %823 = vmatprep.mubr.bf16.mxu0 %v1520_v62  ;;  %p1416_p9 = pnand %p1415_p1, %p1677_p11  ;;  %p1422_p3 = scmp.lt.s32.totalorder %s1420_s24, %s1414_s19 }
  0x90   : > { %1086 = vmatpush3.bf16.msra.mxu1 %v1219_v23  ;;  %794 = vmatpush1.bf16.msra.mxu0 %v1227_v56  ;;  %p1417_p13 = pneg %p1416_p9  ;;  %p1423_p0 = por %p1422_p3, %p1421_p7 }
  0x91   : > { %1087 = vmatprep.subr.bf16.mxu1 %v1518_v0  ;;  %795 = vmatprep.subr.bf16.mxu0 %v1232_v57 }
  0x92   : > { %p1424_p2 = pnand %p1423_p0, %p1417_p13 }
  0x94   : > { %1088 = vmatpush3.bf16.msra.mxu1 %v1220_v24  ;;  %796 = vmatpush1.bf16.msra.mxu0 %v1230_v58 }
  0x95   : > { %1089 = vmatprep.subr.bf16.mxu1 %v1518_v0  ;;  %797 = vmatprep.subr.bf16.mxu0 %v1235_v59 }
  0x98   : > { %1090 = vmatpush3.bf16.msra.mxu1 %v1221_v25  ;;  %798 = vmatpush1.bf16.msra.mxu0 %v1233_v60 }
  0x99   : > { %1091 = vmatprep.subr.bf16.mxu1 %v1518_v0  ;;  %799 = vmatprep.subr.bf16.mxu0 %v1238_v61 }
  0x9c   : > { %1092 = vmatpush3.bf16.msra.mxu1 %v1222_v26  ;;  %800 = vmatpush1.bf16.msra.mxu0 %v1236_v63 }
  0x9d   : > { %1093 = vmatprep.subr.bf16.mxu1 %v1518_v0  ;;  %v1241_v0 = vld [vmem:[#allocation11 + $0x24] ss:$8 sps:$4 sm:$0xff]  }
  0x9e   : > { %801 = vmatprep.subr.bf16.mxu0 %v1241_v0 }
  0xa0   : > { %1094 = vmatpush3.bf16.msra.mxu1 %v1223_v27  ;;  %802 = vmatpush1.bf16.msra.mxu0 %v1239_v1 }
  0xa1   : > { %803 = vmatprep.subr.bf16.mxu0 %v1244_v2 }
  0xa4   : > { %804 = vmatpush1.bf16.msra.mxu0 %v1242_v3 }
  0xa5   : > { %805 = vmatprep.subr.bf16.mxu0 %v1247_v4 }
  0xa8   : > { %806 = vmatpush1.bf16.msra.mxu0 %v1245_v7 }
 0x14b   : > { %v494_v9 = vpop.f32.mrf.mxu0 }
 0x14c   : > { %v521_v10 = vadd.f32 %v520_v8, %v494_v9 }
 0x14d   : > { %v1077_v11 = vpop.f32.mrf.mxu0 }
 0x14e   : > { %524 = vadd.xlane.f32.xlu0 %v521_v10  ;;  %v674_v11 = vrot.slane %v565_v41, %v1756_v31 }
 0x14f   : > { %v497_v12 = vpop.f32.mrf.mxu0 }
 0x151   : > { %v1078_v13 = vpop.f32.mrf.mxu0 }
 0x152   : > { %v679_v13 = vrot.slane %v565_v41, %v544_v32 }
 0x1d7   : > { %v525_v16 = vpop.xlane.xlu0 %524 }
 0x1d8   : > { %v526_v17 = vmul.f32 0.015625, %v525_v16 }
 0x1da   : > { %v528_v18 = vsub.f32 %v521_v10, %v526_v17 }
 0x1dc   : > { %v529_v19 = vsel %vm527_vm2, %v528_v18, 0.0 }
 0x1dd   : > { %v530_v20 = vmul.f32 %v529_v19, %v529_v19 }
 0x1df   : > { %531 = vadd.xlane.f32.xlu0 %v530_v20 }
 0x268   : > { %v532_v28 = vpop.xlane.xlu0 %531 }
 0x269   : > { %v533_v29 = vmul.f32 0.015625, %v532_v28 }
 0x26b   : > { %v534_v30 = vadd.f32 1e-05, %v533_v29  ;;  %v835_v29 = vld [vmem:[%s1743_s13] sm:$0xff] }
 0x26d   : > { %1248 = vrsqrt.f32 %v534_v30 }
 0x27a   : > { %v1249_v34 = vpop.eup %1248 }
 0x27b   : > { %v536_v35 = vmul.f32 %v1249_v34, %v529_v19  ;;  %v699_v19 = vld [vmem:[%s1822_s6] sm:$0x3] }
 0x27c   : > { %v708_v20 = vrot.slane %v699_v19, %v1756_v31  ;;  %v704_v27 = vrot.slane %v699_v19, %v1752_v6 }
 0x27d   : > { %v541_v37 = vmul.f32 %v540_v33, %v536_v35 }
 0x27f   : > { %v546_v38 = vadd.f32 %v545_v36, %v541_v37 }
 0x281   : > { %v547_v39 = vmax.f32 %v546_v38, 0.0 }
 0x283   : > { %v548_v40 = vpack.c.bf16 %v547_v39, %v547_v39 }
 0x285   : > { %1096 = vmatmul.mubr.bf16.vlgmr.msra.gmra.mxu1 %v548_v40 }
 0x345   : > { %v652_v43 = vpop.f32.mrf.mxu1 }
 0x346   : > { %v653_v44 = vadd.f32 %v652_v43, %v569_v42 }
 0x347   : > { %v1097_v45 = vpop.f32.mrf.mxu1 }
 0x348   : > { %658 = vadd.xlane.f32.xlu1 %v653_v44 }
 0x349   : > { %v655_v46 = vpop.f32.mrf.mxu1 }
 0x34b   : > { %v1098_v47 = vpop.f32.mrf.mxu1 }
 0x3d1   : > { %v659_v50 = vpop.xlane.xlu1 %658 }
 0x3d2   : > { %v660_v51 = vmul.f32 0.03125, %v659_v50 }
 0x3d4   : > { %v662_v52 = vsub.f32 %v653_v44, %v660_v51 }
 0x3d6   : > { %v663_v53 = vsel %vm661_vm3, %v662_v52, 0.0 }
 0x3d7   : > { %v664_v54 = vmul.f32 %v663_v53, %v663_v53 }
 0x3d9   : > { %665 = vadd.xlane.f32.xlu1 %v664_v54 }
 0x462   : > { %v666_v8 = vpop.xlane.xlu1 %665 }
 0x463   : > { %v667_v9 = vmul.f32 0.03125, %v666_v8 }
 0x465   : > { %v668_v10 = vadd.f32 1e-05, %v667_v9 }
 0x467   : > { %1250 = vrsqrt.f32 %v668_v10 }
 0x474   : > { %v1251_v12 = vpop.eup %1250 }
 0x475   : > { %v670_v14 = vmul.f32 %v1251_v12, %v663_v53 }
 0x477   : > { %v675_v15 = vmul.f32 %v674_v11, %v670_v14 }
 0x479   : > { %v680_v16 = vadd.f32 %v679_v13, %v675_v15 }
 0x47b   : > { %v681_v17 = vmax.f32 %v680_v16, 0.0 }
 0x47d   : > { %v682_v18 = vpack.c.bf16 %v681_v17, %v681_v17 }
 0x47f   : > { %824 = vmatmul.mubr.bf16.vlgmr.msra.gmra.mxu0 %v682_v18 }
 0x53f   : > { %v825_v21 = vpop.f32.mrf.mxu0 }
 0x540   : > { %v826_v28 = vadd.f32 %v825_v21, %v704_v27 }
 0x541   : > { %v827_v22 = vpop.f32.mrf.mxu0 }
 0x542   : > { %v828_v23 = vadd.f32 %v827_v22, %v708_v20  ;;  %v838_v32 = vmul.f32 %v826_v28, %v826_v28 }
 0x543   : > { %v829_v24 = vpop.f32.mrf.mxu0 }
 0x544   : > { %v832_v5 = vmul.f32 0.5, %v828_v23 }
 0x545   : > { %v830_v25 = vpop.f32.mrf.mxu0 }
 0x546   : > { %v833_v26 = vmul.f32 1.442695, %v832_v5 }
 0x548   : > { %1252 = vpow2.f32 %v833_v26 }
 0x555   : > { %v1253_v30 = vpop.eup %1252 }
 0x556   : > { %v839_v33 = vmul.f32 %v1253_v30, %v1253_v30  ;;  %v836_v34 = vmul.f32 %v1253_v30, %v835_v29 }
 0x558   : > { %v840_v31 = vadd.f32 %v839_v33, %v838_v32  ;;  %v837_v35 = vadd.f32 %v836_v34, %v826_v28 }
 0x55a   : > { %v841_v36 = vsub.f32 %v840_v31, %v828_v23  ;;  %846 = vst [vmem:[%s436_s15] sm:$0xff] %v837_v35 }
 0x55c   : > { %v1052_v37 = vadd.f32 -1.0, %v841_v36 }
 0x55e   : > { %843 = vadd.xlane.f32.xlu0 %v1052_v37 }
 0x5e7   : > { %v844_v38 = vpop.xlane.xlu0 %843 }
 0x5e8   : > { %v845_v6 = vmul.f32 0.5, %v844_v38 }
 0x5ea   : > { %847 = vst [vmem:[%s436_s15 + $0x8] sm:$0xff] %v845_v6 }
 0x5eb   : > { %1427 = shalt.err (!%p1424_p2)
}
 0x5ec   : > { %s1428_s30 = scalar_lea.hbm %s861_s1, 256  ;;  %s1432_s29 = scalar_lea.hbm %s1824_s8, 512 }
 0x5ed   : > { %p1429_p5 = scmp.ne.s32.totalorder %s861_s1, %s1428_s30  ;;  %p1433_p8 = scmp.lt.s32.totalorder %s861_s1, %s1824_s8 }
 0x5ee   : > { %p1434_p10 = scmp.lt.s32.totalorder %s1432_s29, %s1428_s30 }
 0x5ef   : > { %p1430_p4 = pnand %p1429_p5, %p1677_p11 }
 0x5f0   : > { %p1435_p1 = por %p1434_p10, %p1433_p8 }
 0x5f1   : > { %p1431_p6 = pneg %p1430_p4 }
 0x5f3   : > { %p1436_p9 = pnand %p1435_p1, %p1431_p6 }
 0x5f5   : > { %1439 = shalt.err (!%p1436_p9)
}
 0x5f6   : > { %1119 = dma.vmem_to_hbm [thread:$0]  (%p1677_p11), %s864_s25, 256, %s861_s1, %s849_s5  }
 0x5f7 PF: > { %s875_s21 = sand.u32 1, %s1486_s27   ;;  %p1850_p13 = scmp.ge.s32.totalorder %s1506_s10, 2 }
 0x5f8   : > { %s876_s22 = scalar_lea.sflag [#allocation5], %s875_s21 }
 0x5f9   : > { %p1142_p7 = pnand %p1850_p13, %p1684_p12 }
 0x5fb   : > { %p1143_p3 = pneg %p1142_p7 }
 0x5fd   : > { %1481 = dma.done.wait (%p1143_p3), %s876_s22, 256  }
 0x5fe   : > { %1483 = vsyncadd (%p1143_p3), %s876_s22, 4294967040  ;;  %s29_s10 = sadd.s32 1, %s1506_s10   ;;  %s1851_s16 = sld [smem:[#allocation20_spill]] }
 0x5ff   : > { %p26_p0 = scmp.ge.s32.totalorder %s29_s10, 4   ;;  %s1852_s29 = sld [smem:[#allocation22_spill]] }
 0x600   : > { %s1853_s18 = sld [smem:[#allocation21_spill]]  ;;  %s1854_s27 = smov %s1490_s28 }
 0x601   : > { %s1856_s30 = smov %s1502_s9 }
 0x602   :  { %28 = sbr.rel (!%p26_p0) target bundleno = 16 (0x10), region = 139 }
 0x604   : > { %s1855_s28 = smov %s1851_s16 }
 0x606   : > { %s1857_s9 = smov %s1853_s18 }
 0x607   :  { %881 = vsyncpa [#allocation4], 1 }
 0x608   :  { %883 = vsyncpa [#allocation4 + $0x1], 1 }
 0x609   :  { %884 = vsyncpa [#allocation7], 1 }
 0x60a   :  { %885 = vsyncpa [#allocation10], 1 }
 0x60b   :  { %886 = vsyncpa [#allocation13], 1 }
 0x60c   :  { %888 = vsyncpa [#allocation13 + $0x1], 1 }
 0x60d   :  { %889 = vsyncpa [#allocation5], 1 }
 0x60e   :  { %891 = vsyncpa [#allocation5 + $0x1], 1 }

</bundles_post_ra>
